<compile_context>
chip_gen: v7x
topology: tpu7x:2x2x1
jax: 0.10.0
libtpu: 0.0.40
codegen_flags: <defaults>
</compile_context>

<pallas_src>
import numpy as np
import jax
import jax.numpy as jnp
from jax import lax
from jax.experimental import pallas as pl
from jax.experimental.pallas import tpu as pltpu

# ---- problem constants (from the PyTorch module / its example input) ----
N, C, H, W = 1, 2, 9, 12          # input_1 = torch.randn(1, 2, 9, 12)
O, KH, KW = 8, 3, 3               # Conv2d(2, 8, 3, ...)
STRIDE, PAD = 2, 1
H_OUT = (H + 2 * PAD - KH) // STRIDE + 1    # 5
W_OUT = (W + 2 * PAD - KW) // STRIDE + 1    # 6


def _build_selectors():
    """0/1 selection matrices as trace-time numpy constants (zero runtime cost).

    colsel_all[w, kw*W_OUT + ow] = 1  iff  w == STRIDE*ow + kw - PAD
    rowsel[kh, oh, h]            = 1  iff  h == STRIDE*oh + kh - PAD
    Out-of-range (padding) indices simply never match -> implicit zero padding.
    """
    colsel_all = np.zeros((W, KW * W_OUT), np.float32)
    for kw in range(KW):
        for ow in range(W_OUT):
            w_idx = STRIDE * ow + kw - PAD
            if 0 <= w_idx < W:
                colsel_all[w_idx, kw * W_OUT + ow] = 1.0
    rowsel = np.zeros((KH, H_OUT, H), np.float32)
    for kh in range(KH):
        for oh in range(H_OUT):
            h_idx = STRIDE * oh + kh - PAD
            if 0 <= h_idx < H:
                rowsel[kh, oh, h_idx] = 1.0
    return colsel_all, rowsel


_COLSEL_ALL_NP, _ROWSEL_NP = _build_selectors()


def _fused_conv_kernel(x_ref, colsel_ref, mw_ref, b_ref, o_ref):
    """Conv2d(2->8, k=3, s=2, p=1) as 4 small MXU matmuls + one bias add.

    out[(o*H_OUT+oh), ow]
      = b[o] + sum_kw sum_{c,h} Mw[kw][(o,oh),(c,h)] * Y[(c,h), kw*W_OUT+ow]
    with Y = x_flat @ colsel_all (all shifted/strided taps, zero where padded).
    """
    f32 = jnp.float32
    # Y[(c,h), (kw,ow)] = x[c, h, STRIDE*ow + kw - PAD]   (0 where padded)
    y = jnp.dot(x_ref[...], colsel_ref[...], preferred_element_type=f32)  # (18, 18)

    acc = jnp.dot(mw_ref[0], y[:, 0:W_OUT], preferred_element_type=f32)   # (40, 6)
    for kw in range(1, KW):
        acc = acc + jnp.dot(mw_ref[kw], y[:, kw * W_OUT:(kw + 1) * W_OUT],
                            preferred_element_type=f32)

    # bias: (40, 1) broadcast along lanes; single lane-dense (40, 6) store.
    o_ref[...] = (acc + b_ref[...]).astype(o_ref.dtype)


@jax.jit
def model_forward(x_nchw, weight_oihw, bias_o):
    """Replicates Model.forward: returns (identity, features), features in NCHW."""
    x32 = x_nchw.astype(jnp.float32)
    x_flat = x32.reshape(C * H, W)                                # (18, 12), metadata-only

    colsel_all = jnp.asarray(_COLSEL_ALL_NP)                      # (12, 18) constant
    rowsel = jnp.asarray(_ROWSEL_NP)                              # (3, 5, 9) constant

    # Fold weights + row selection (parameter-only, tiny):
    # Mw[kw, o, oh, c, h] = sum_kh w[o,c,kh,kw] * rowsel[kh, oh, h]
    w32 = weight_oihw.astype(jnp.float32)
    mw = jnp.einsum('ocab,aqh->boqch', w32, rowsel)               # (KW, O, H_OUT, C, H)
    mw = mw.reshape(KW, O * H_OUT, C * H)                         # (3, 40, 18)

    # bias2[(o*H_OUT+oh)] = b[o]
    bias2 = jnp.repeat(bias_o.astype(jnp.float32), H_OUT).reshape(O * H_OUT, 1)  # (40, 1)

    flops = 2 * (C * H * W * KW * W_OUT + KW * (O * H_OUT) * (C * H) * W_OUT)
    bytes_accessed = 4 * (C * H * W + W * KW * W_OUT + KW * O * H_OUT * C * H
                          + O * H_OUT + O * H_OUT * W_OUT)

    out2d = pl.pallas_call(
        _fused_conv_kernel,
        out_shape=jax.ShapeDtypeStruct((O * H_OUT, W_OUT), jnp.float32),
        in_specs=[
            pl.BlockSpec(memory_space=pltpu.MemorySpace.VMEM),   # x_flat (18, 12)
            pl.BlockSpec(memory_space=pltpu.MemorySpace.VMEM),   # colsel_all (12, 18)
            pl.BlockSpec(memory_space=pltpu.MemorySpace.VMEM),   # Mw (3, 40, 18)
            pl.BlockSpec(memory_space=pltpu.MemorySpace.VMEM),   # bias2 (40, 1)
        ],
        out_specs=pl.BlockSpec(memory_space=pltpu.MemorySpace.VMEM),
        cost_estimate=pl.CostEstimate(flops=flops, transcendentals=0,
                                      bytes_accessed=bytes_accessed),
    )(x_flat, colsel_all, mw, bias2)

    features = out2d.reshape(N, O, H_OUT, W_OUT)   # metadata-only on contiguous array
    identity = x_nchw                              # zero-copy pass-through
    return identity, features


if __name__ == "__main__":
    key = jax.random.PRNGKey(0)
    k_x, k_w, k_b = jax.random.split(key, 3)

    # deterministic "parameters" (synthetic init, same shapes as nn.Conv2d(2, 8, 3))
    x = jax.random.normal(k_x, (N, C, H, W), dtype=jnp.float32)
    fan_in = C * KH * KW
    bound = 1.0 / (fan_in ** 0.5)
    weight = jax.random.uniform(k_w, (O, C, KH, KW), jnp.float32, -bound, bound)
    bias = jax.random.uniform(k_b, (O,), jnp.float32, -bound, bound)

    identity, features = model_forward(x, weight, bias)
    jax.block_until_ready((identity, features))

    # reference check (plain JAX conv, same semantics as torch Conv2d NCHW)
    ref = lax.conv_general_dilated(
        x, weight, window_strides=(STRIDE, STRIDE),
        padding=[(PAD, PAD), (PAD, PAD)],
        dimension_numbers=("NCHW", "OIHW", "NCHW"),
    ) + bias[None, :, None, None]

    assert identity.shape == (N, C, H, W)
    assert features.shape == (N, O, H_OUT, W_OUT)
    assert jnp.allclose(identity, x)
    assert jnp.allclose(features, ref, atol=1e-5, rtol=1e-5)

    print("KERNEL_OK")
</pallas_src>

<mosaic_0001>
module attributes {stable_mosaic.version = 11 : i64} {
  func.func @_fused_conv_kernel(%arg0: memref<18x12xf32, #tpu.memory_space<vmem>>, %arg1: memref<12x18xf32, #tpu.memory_space<vmem>>, %arg2: memref<3x40x18xf32, #tpu.memory_space<vmem>>, %arg3: memref<40x1xf32, #tpu.memory_space<vmem>>, %arg4: memref<40x6xf32, #tpu.memory_space<vmem>>) attributes {dimension_semantics = [], scalar_prefetch = 0 : i64, scratch_operands = 0 : i64, tpu.core_type = #tpu.core_type<tc>} {
    %c0 = arith.constant 0 : index
    %c0_0 = arith.constant 0 : index
    %0 = vector.load %arg0[%c0, %c0_0] : memref<18x12xf32, #tpu.memory_space<vmem>>, vector<18x12xf32>
    %c0_1 = arith.constant 0 : index
    %c0_2 = arith.constant 0 : index
    %1 = vector.load %arg1[%c0_1, %c0_2] : memref<12x18xf32, #tpu.memory_space<vmem>>, vector<12x18xf32>
    %cst = arith.constant dense<0.000000e+00> : vector<18x18xf32>
    %2 = tpu.matmul %0, %1, %cst {dimension_numbers = #tpu.dot_dimension_numbers<[1], [0], [0], [1], [0, 0, 1, 1], [], []>} : vector<18x12xf32>, vector<12x18xf32>, vector<18x18xf32> -> vector<18x18xf32>
    %c0_3 = arith.constant 0 : index
    %c0_4 = arith.constant 0 : index
    %c0_5 = arith.constant 0 : index
    %3 = vector.load %arg2[%c0_3, %c0_4, %c0_5] : memref<3x40x18xf32, #tpu.memory_space<vmem>>, vector<1x40x18xf32>
    %4 = vector.shape_cast %3 : vector<1x40x18xf32> to vector<40x18xf32>
    %5 = vector.extract_strided_slice %2 {offsets = [0, 0], sizes = [18, 6], strides = [1, 1]} : vector<18x18xf32> to vector<18x6xf32>
    %cst_6 = arith.constant dense<0.000000e+00> : vector<40x6xf32>
    %6 = tpu.matmul %4, %5, %cst_6 {dimension_numbers = #tpu.dot_dimension_numbers<[1], [0], [0], [1], [0, 0, 1, 1], [], []>} : vector<40x18xf32>, vector<18x6xf32>, vector<40x6xf32> -> vector<40x6xf32>
    %c1 = arith.constant 1 : index
    %c0_7 = arith.constant 0 : index
    %c0_8 = arith.constant 0 : index
    %7 = vector.load %arg2[%c1, %c0_7, %c0_8] : memref<3x40x18xf32, #tpu.memory_space<vmem>>, vector<1x40x18xf32>
    %8 = vector.shape_cast %7 : vector<1x40x18xf32> to vector<40x18xf32>
    %9 = vector.extract_strided_slice %2 {offsets = [0, 6], sizes = [18, 6], strides = [1, 1]} : vector<18x18xf32> to vector<18x6xf32>
    %cst_9 = arith.constant dense<0.000000e+00> : vector<40x6xf32>
    %10 = tpu.matmul %8, %9, %cst_9 {dimension_numbers = #tpu.dot_dimension_numbers<[1], [0], [0], [1], [0, 0, 1, 1], [], []>} : vector<40x18xf32>, vector<18x6xf32>, vector<40x6xf32> -> vector<40x6xf32>
    %11 = arith.addf %6, %10 : vector<40x6xf32>
    %c2 = arith.constant 2 : index
    %c0_10 = arith.constant 0 : index
    %c0_11 = arith.constant 0 : index
    %12 = vector.load %arg2[%c2, %c0_10, %c0_11] : memref<3x40x18xf32, #tpu.memory_space<vmem>>, vector<1x40x18xf32>
    %13 = vector.shape_cast %12 : vector<1x40x18xf32> to vector<40x18xf32>
    %14 = vector.extract_strided_slice %2 {offsets = [0, 12], sizes = [18, 6], strides = [1, 1]} : vector<18x18xf32> to vector<18x6xf32>
    %cst_12 = arith.constant dense<0.000000e+00> : vector<40x6xf32>
    %15 = tpu.matmul %13, %14, %cst_12 {dimension_numbers = #tpu.dot_dimension_numbers<[1], [0], [0], [1], [0, 0, 1, 1], [], []>} : vector<40x18xf32>, vector<18x6xf32>, vector<40x6xf32> -> vector<40x6xf32>
    %16 = arith.addf %11, %15 : vector<40x6xf32>
    %c0_13 = arith.constant 0 : index
    %c0_14 = arith.constant 0 : index
    %17 = vector.load %arg3[%c0_13, %c0_14] : memref<40x1xf32, #tpu.memory_space<vmem>>, vector<40x1xf32>
    %18 = vector.broadcast %17 : vector<40x1xf32> to vector<40x6xf32>
    %19 = arith.addf %16, %18 : vector<40x6xf32>
    %c0_15 = arith.constant 0 : index
    %c0_16 = arith.constant 0 : index
    %20 = vector.load %arg4[%c0_15, %c0_16] : memref<40x6xf32, #tpu.memory_space<vmem>>, vector<40x6xf32>
    tpu.vector_store %arg4[%c0_15, %c0_16], %19 {strides = array<i32>} : memref<40x6xf32, #tpu.memory_space<vmem>>, vector<40x6xf32>,
    return
  }
}

</mosaic_0001>

<bundles_post_ra>
// kernel: model_forward.1
= control target key start
LH: loop header
LB: loop body
LE: loop exit
PB: predicated region body
PF: predicated region fallthrough
CT: control target
= control target key end

     0   :  { %vm32_vm0 = vcmask 1043456   ;;  %v698_v0 = vmov 0.0|0.0   ;;  %vm699_vm1 = vmmov 1   ;;  %vm700_vm3 = vmmov 0   ;;  %s702_s24 = smov 116   ;;  %s703_s25 = smov 122   ;;  %s889_s1 = inlined_call_operand.vmem [shape: f32[12,18], index: 1, kind: input, shape index: {}]   ;;  %s890_s0 = inlined_call_operand.vmem [shape: f32[18,12], index: 0, kind: input, shape index: {}]   ;;  %s891_s2 = inlined_call_operand.vmem [shape: f32[3,40,18], index: 2, kind: input, shape index: {}]   ;;  %s892_s3 = inlined_call_operand.vmem [shape: f32[40,1], index: 3, kind: input, shape index: {}]   ;;  %s893_s4 = inlined_call_operand.vmem [shape: f32[40,6], index: 4, kind: output, shape index: {}]  }
   0x1   :  { %662 = vmatprep.subr.bf16.mxu0 %v698_v0  ;;  %v20_v1 = vld [vmem:[%s889_s1] sm:$0xff]  ;;  %v21_v2 = vld [vmem:[%s889_s1 + $0x8] sm:$0xf]  ;;  %vm664_vm2 = vmpackc.low %vm32_vm0, %vm699_vm1  ;;  %666 = vmatprep.subr.bf16.mxu1 %v698_v0  ;;  %v701_v4 = vmov 0.0   ;;  %vm22_vm4 = vcmask 97280   ;;  %vm154_vm5 = vcmask 1041408  }
   0x2   :  { %v663_v3 = vpack.c.bf16 %v21_v2, %v20_v1  ;;  %590 = vmatprep.mubr.msk.f32.mxu0 %vm700_vm3, %v701_v4  ;;  %605 = vmatprep.mubr.msk.f32.mxu1 %vm700_vm3, %v701_v4  ;;  %v17_v5 = vld [vmem:[%s890_s0] sm:$0xff]  ;;  %v18_v6 = vld [vmem:[%s890_s0 + $0x8] sm:$0xff]  ;;  %v19_v7 = vld [vmem:[%s890_s0 + $0x10] sm:$0x3]  ;;  %vm138_vm6 = vcmask 146432   ;;  %v704_v21 = vmov 0  }
   0x3   :  { %v116_v16 = vld [vmem:[%s891_s2] sm:$0xff]  ;;  %v117_v17 = vld [vmem:[%s891_s2 + $0x8] sm:$0xff]  ;;  %v118_v18 = vld [vmem:[%s891_s2 + $0x10] sm:$0xff]  ;;  %696 = vset.pattern.permute.xlu0 %v704_v21  ;;  %697 = vset.pattern.permute.xlu1 %v704_v21  ;;  %vm515_vm7 = vcmask 48128  }
   0x4   :  { %665 = vmatpush3.bf16.msk.msra.mxu0 %vm664_vm2, %v663_v3  ;;  %v119_v19 = vld [vmem:[%s891_s2 + $0x18] sm:$0xff]  ;;  %v120_v20 = vld [vmem:[%s891_s2 + $0x20] sm:$0xff]  ;;  %v481_v23 = vld [vmem:[%s892_s3 + $0x8] sm:$0xff] }
   0x5   :  { %669 = vmatprep.subr.bf16.mxu0 %v698_v0  ;;  %v480_v22 = vld [vmem:[%s892_s3] sm:$0xff]  ;;  %v482_v24 = vld [vmem:[%s892_s3 + $0x10] sm:$0xff]  ;;  %v483_v25 = vld [vmem:[%s892_s3 + $0x18] sm:$0xff] }
   0x6   :  { %v484_v26 = vld [vmem:[%s892_s3 + $0x20] sm:$0xff]  ;;  %v529_v37 = vld [vmem:[%s891_s2 + $0x28] sm:$0xff]  ;;  %v546_v38 = vld [vmem:[%s891_s2 + $0x50] sm:$0xff] }
   0x7   :  { %591 = vmatmul.mubr.msk.f32.vlgmr.msra.gmra.mrb[0].mxu0 %vm22_vm4, %v17_v5  ;;  %v530_v39 = vld [vmem:[%s891_s2 + $0x30] sm:$0xff]  ;;  %v531_v40 = vld [vmem:[%s891_s2 + $0x38] sm:$0xff]  ;;  %v532_v41 = vld [vmem:[%s891_s2 + $0x40] sm:$0xff] }
   0x8   :  { %593 = vmatprep.mubr.msk.f32.mxu0 %vm700_vm3, %v701_v4  ;;  %v533_v42 = vld [vmem:[%s891_s2 + $0x48] sm:$0xff]  ;;  %v547_v43 = vld [vmem:[%s891_s2 + $0x58] sm:$0xff]  ;;  %v548_v44 = vld [vmem:[%s891_s2 + $0x60] sm:$0xff] }
   0x9   :  { %v549_v45 = vld [vmem:[%s891_s2 + $0x68] sm:$0xff]  ;;  %v550_v46 = vld [vmem:[%s891_s2 + $0x70] sm:$0xff] }
   0xb   :  { %594 = vmatmul.mubr.msk.f32.gmra.mrb[2].mxu0 %vm22_vm4, %v18_v6 }
   0xc   :  { %596 = vmatprep.mubr.msk.f32.mxu0 %vm700_vm3, %v701_v4 }
   0xf   :  { %597 = vmatmul.mubr.msk.f32.gmra.mrb[4].mxu0 %vm22_vm4, %v19_v7 }
  0x10   :  { %626 = vmatprep.mubr.msk.f32.mxu0 %vm700_vm3, %v701_v4 }
  0xda   :  { %v102_v8 = vpop.f32.mrb[0].mxu0 }
  0xdb   :  { %v592_v9 = vpop.f32.mrb[1].mxu0 }
  0xde   :  { %v107_v10 = vpop.f32.mrb[2].mxu0 }
  0xdf   :  { %v670_v11 = vpack.c.bf16 %v107_v10, %v102_v8  ;;  %v595_v12 = vpop.f32.mrb[3].mxu0  ;;  %v691_v13 = vpack.i.bf16 %v107_v10, %v102_v8 }
  0xe1   :  { %692 = vrot.lane.b32.xlu1 %v691_v13, %s702_s24  ;;  %687 = vrot.lane.b32.xlu0 %v691_v13, %s703_s25 }
  0xe2   :  { %671 = vmatpush3.bf16.msra.mxu0 %v670_v11  ;;  %v112_v14 = vpop.f32.mrb[4].mxu0 }
  0xe3   :  { %v598_v15 = vpop.f32.mrb[5].mxu0  ;;  %624 = vmatprep.subr.mxu0 %v701_v4 }
  0xe5   :  { %364 = vrot.lane.b32.xlu1 %v112_v14, %s702_s24  ;;  %134 = vrot.lane.b32.xlu0 %v112_v14, %s703_s25 }
  0xe6   :  { %625 = vmatpush3.msk.msra.mxu0 %vm154_vm5, %v112_v14 }
  0xe7   :  { %627 = vmatmul.mubr.msk.f32.vlgmr.msra.gmra.mrb[6].mxu0 %vm138_vm6, %v116_v16  ;;  %672 = vmatprep.subr.bf16.mxu0 %v698_v0 }
  0xe8   :  { %629 = vmatprep.mubr.msk.f32.mxu0 %vm700_vm3, %v701_v4 }
  0xe9   :  { %487 = vperm.xlu0 %696, %v480_v22   ;;  %492 = vperm.xlu1 %697, %v481_v23  }
  0xeb   :  { %630 = vmatmul.mubr.msk.f32.gmra.mrb[8].mxu0 %vm138_vm6, %v117_v17 }
  0xec   :  { %632 = vmatprep.mubr.msk.f32.mxu0 %vm700_vm3, %v701_v4 }
  0xed   :  { %497 = vperm.xlu1 %697, %v482_v24   ;;  %502 = vperm.xlu0 %696, %v483_v25  }
  0xef   :  { %633 = vmatmul.mubr.msk.f32.gmra.mrb[10].mxu0 %vm138_vm6, %v118_v18 }
  0xf0   :  { %635 = vmatprep.mubr.msk.f32.mxu0 %vm700_vm3, %v701_v4 }
  0xf1   :  { %507 = vperm.xlu1 %697, %v484_v26  }
  0xf3   :  { %636 = vmatmul.mubr.msk.f32.gmra.mrb[12].mxu0 %vm138_vm6, %v119_v19 }
  0xf4   :  { %638 = vmatprep.mubr.msk.f32.mxu0 %vm700_vm3, %v701_v4 }
  0xf7   :  { %639 = vmatmul.mubr.msk.f32.gmra.mrb[14].mxu0 %vm138_vm6, %v120_v20 }
  0xf8   :  { %647 = vmatprep.mubr.msk.f32.mxu0 %vm700_vm3, %v701_v4 }
 0x153   :  { %v693_v27 = vpop.permute.xlu1 %692  ;;  %v688_v28 = vpop.permute.xlu0 %687 }
 0x154   :  { %v695_v29 = vunpack.i.h.bf16 %v693_v27  ;;  %v694_v30 = vunpack.i.l.bf16 %v693_v27  ;;  %v690_v31 = vunpack.i.h.bf16 %v688_v28  ;;  %v689_v32 = vunpack.i.l.bf16 %v688_v28 }
 0x156   :  { %v673_v33 = vpack.c.bf16 %v695_v29, %v694_v30  ;;  %v667_v34 = vpack.c.bf16 %v690_v31, %v689_v32 }
 0x157   :  { %v365_v35 = vpop.permute.xlu1 %364  ;;  %v135_v36 = vpop.permute.xlu0 %134 }
 0x158   :  { %668 = vmatpush3.bf16.msra.mxu1 %v667_v34  ;;  %674 = vmatpush3.bf16.msra.mxu0 %v673_v33 }
 0x159   :  { %603 = vmatprep.subr.mxu1 %v701_v4  ;;  %645 = vmatprep.subr.mxu0 %v701_v4 }
 0x15c   :  { %604 = vmatpush3.msk.msra.mxu1 %vm154_vm5, %v135_v36  ;;  %646 = vmatpush3.msk.msra.mxu0 %vm154_vm5, %v365_v35 }
 0x15d   :  { %606 = vmatmul.mubr.msk.f32.vlgmr.msra.gmra.mrb[0].mxu1 %vm138_vm6, %v529_v37  ;;  %675 = vmatprep.subr.bf16.mxu1 %v698_v0 }
 0x15e   :  { %677 = vmatpush3.bf16.msra.mxu1 %v673_v33  ;;  %608 = vmatprep.mubr.msk.f32.mxu1 %vm700_vm3, %v701_v4 }
 0x15f   :  { %648 = vmatmul.mubr.msk.f32.vlgmr.msra.gmra.mrb[16].mxu0 %vm138_vm6, %v546_v38  ;;  %676 = vmatprep.subr.mxu1 %v701_v4 }
 0x161   :  { %609 = vmatmul.mubr.msk.f32.gmra.mrb[2].mxu1 %vm138_vm6, %v530_v39 }
 0x162   :  { %678 = vmatpush3.msk.msra.mxu1 %vm154_vm5, %v365_v35  ;;  %611 = vmatprep.mubr.msk.f32.mxu1 %vm700_vm3, %v701_v4 }
 0x165   :  { %612 = vmatmul.mubr.msk.f32.gmra.mrb[4].mxu1 %vm138_vm6, %v531_v40 }
 0x166   :  { %614 = vmatprep.mubr.msk.f32.mxu1 %vm700_vm3, %v701_v4 }
 0x168   :  { %v488_v61 = vpop.permute.xlu0 %487  ;;  %v493_v13 = vpop.permute.xlu1 %492 }
 0x169   :  { %615 = vmatmul.mubr.msk.f32.gmra.mrb[6].mxu1 %vm138_vm6, %v532_v41 }
 0x16a   :  { %617 = vmatprep.mubr.msk.f32.mxu1 %vm700_vm3, %v701_v4 }
 0x16c   :  { %v498_v21 = vpop.permute.xlu1 %497  ;;  %v503_v24 = vpop.permute.xlu0 %502 }
 0x16d   :  { %618 = vmatmul.mubr.msk.f32.gmra.mrb[8].mxu1 %vm138_vm6, %v533_v42 }
 0x16e   :  { %650 = vmatprep.mubr.msk.f32.mxu1 %vm700_vm3, %v701_v4 }
 0x170   :  { %v508_v31 = vpop.permute.xlu1 %507 }
 0x171   :  { %651 = vmatmul.mubr.msk.f32.vlgmr.msra.gmra.mrb[10].mxu1 %vm138_vm6, %v547_v43 }
 0x172   :  { %653 = vmatprep.mubr.msk.f32.mxu1 %vm700_vm3, %v701_v4 }
 0x175   :  { %654 = vmatmul.mubr.msk.f32.gmra.mrb[12].mxu1 %vm138_vm6, %v548_v44 }
 0x176   :  { %656 = vmatprep.mubr.msk.f32.mxu1 %vm700_vm3, %v701_v4 }
 0x179   :  { %657 = vmatmul.mubr.msk.f32.gmra.mrb[14].mxu1 %vm138_vm6, %v549_v45 }
 0x17a   :  { %659 = vmatprep.mubr.msk.f32.mxu1 %vm700_vm3, %v701_v4 }
 0x17d   :  { %660 = vmatmul.mubr.msk.f32.gmra.mrb[16].mxu1 %vm138_vm6, %v550_v46 }
 0x1ba   :  { %v330_v47 = vpop.f32.mrb[6].mxu0 }
 0x1bb   :  { %v628_v48 = vpop.f32.mrb[7].mxu0 }
 0x1be   :  { %v335_v49 = vpop.f32.mrb[8].mxu0 }
 0x1bf   :  { %v631_v50 = vpop.f32.mrb[9].mxu0 }
 0x1c2   :  { %v340_v51 = vpop.f32.mrb[10].mxu0 }
 0x1c3   :  { %v634_v52 = vpop.f32.mrb[11].mxu0 }
 0x1c6   :  { %v345_v53 = vpop.f32.mrb[12].mxu0 }
 0x1c7   :  { %v637_v54 = vpop.f32.mrb[13].mxu0 }
 0x1ca   :  { %v350_v55 = vpop.f32.mrb[14].mxu0 }
 0x1cb   :  { %v640_v56 = vpop.f32.mrb[15].mxu0 }
 0x230   :  { %v223_v57 = vpop.f32.mrb[0].mxu1 }
 0x231   :  { %v331_v58 = vadd.f32 %v330_v47, %v223_v57  ;;  %v607_v59 = vpop.f32.mrb[1].mxu1 }
 0x232   :  { %v451_v60 = vpop.f32.mrb[16].mxu0 }
 0x233   :  { %v475_v62 = vadd.f32 %v451_v60, %v331_v58  ;;  %v649_v63 = vpop.f32.mrb[17].mxu0 }
 0x234   :  { %v228_v0 = vpop.f32.mrb[2].mxu1 }
 0x235   :  { %v336_v1 = vadd.f32 %v335_v49, %v228_v0  ;;  %v610_v2 = vpop.f32.mrb[3].mxu1  ;;  %v510_v3 = vadd.f32 %v488_v61, %v475_v62 }
 0x237   :  { %516 = vst.msk [vmem:[%s893_s4] sm:$0xff] %vm515_vm7, %v510_v3 }
 0x238   :  { %v233_v4 = vpop.f32.mrb[4].mxu1 }
 0x239   :  { %v341_v5 = vadd.f32 %v340_v51, %v233_v4  ;;  %v613_v6 = vpop.f32.mrb[5].mxu1 }
 0x23c   :  { %v238_v7 = vpop.f32.mrb[6].mxu1 }
 0x23d   :  { %v346_v8 = vadd.f32 %v345_v53, %v238_v7  ;;  %v616_v9 = vpop.f32.mrb[7].mxu1 }
 0x240   :  { %v243_v10 = vpop.f32.mrb[8].mxu1 }
 0x241   :  { %v351_v11 = vadd.f32 %v350_v55, %v243_v10  ;;  %v619_v12 = vpop.f32.mrb[9].mxu1 }
 0x244   :  { %v456_v14 = vpop.f32.mrb[10].mxu1 }
 0x245   :  { %v476_v15 = vadd.f32 %v456_v14, %v336_v1  ;;  %v652_v16 = vpop.f32.mrb[11].mxu1 }
 0x247   :  { %v511_v17 = vadd.f32 %v493_v13, %v476_v15 }
 0x248   :  { %v461_v18 = vpop.f32.mrb[12].mxu1 }
 0x249   :  { %517 = vst.msk [vmem:[%s893_s4 + $0x8] sm:$0xff] %vm515_vm7, %v511_v17  ;;  %v477_v19 = vadd.f32 %v461_v18, %v341_v5  ;;  %v655_v20 = vpop.f32.mrb[13].mxu1 }
 0x24b   :  { %v512_v22 = vadd.f32 %v498_v21, %v477_v19 }
 0x24c   :  { %v466_v23 = vpop.f32.mrb[14].mxu1 }
 0x24d   :  { %518 = vst.msk [vmem:[%s893_s4 + $0x10] sm:$0xff] %vm515_vm7, %v512_v22  ;;  %v478_v25 = vadd.f32 %v466_v23, %v346_v8  ;;  %v658_v26 = vpop.f32.mrb[15].mxu1 }
 0x24f   :  { %v513_v27 = vadd.f32 %v503_v24, %v478_v25 }
 0x250   :  { %v471_v28 = vpop.f32.mrb[16].mxu1 }
 0x251   :  { %519 = vst.msk [vmem:[%s893_s4 + $0x18] sm:$0xff] %vm515_vm7, %v513_v27  ;;  %v479_v29 = vadd.f32 %v471_v28, %v351_v11  ;;  %v661_v30 = vpop.f32.mrb[17].mxu1 }
 0x253   :  { %v514_v32 = vadd.f32 %v508_v31, %v479_v29 }
 0x255   :  { %520 = vst.msk [vmem:[%s893_s4 + $0x20] sm:$0xff] %vm515_vm7, %v514_v32 }

</bundles_post_ra>
